<compile_context>
chip_gen: v6e
topology: v6e:2x2x1
jax: 0.10.0
libtpu: 0.0.40
codegen_flags: <defaults>
</compile_context>

<pallas_src>
import jax
import jax.numpy as jnp
from jax import lax
from jax.experimental import pallas as pl
from jax.experimental.pallas import tpu as pltpu

LANE = 128
NEG_BIG = -1e30  # bias for padded cluster columns -> exp underflows to 0


def _round_up(v, m):
    return (v + m - 1) // m * m


def graphpool_kernel(x_ref, adj_ref, w_ref, b_ref,
                     new_adj_ref, new_feat_ref, s_ref):
    x = x_ref[...]        # (Bt, N, Fp)
    adj = adj_ref[...]    # (Bt, N, N)
    w = w_ref[...]        # (Fp, Hp)
    b = b_ref[...]        # (1, Hp) -- padded cluster columns hold -1e30

    # compute_clusters: S = softmax(x @ W + b) over the cluster axis.
    logits = lax.dot_general(
        x, w, dimension_numbers=(((2,), (0,)), ((), ())),
        preferred_element_type=jnp.float32) + b           # (Bt, N, Hp)
    m = jnp.max(logits, axis=-1, keepdims=True)
    e = jnp.exp(logits - m)
    denom = jnp.sum(e, axis=-1, keepdims=True)
    s = e * pl.reciprocal(denom, approx=True)             # (Bt, N, Hp)

    # compute_feats: new_feat[b] = S[b]^T @ x[b] -- contract node axis, no .T
    new_feat = lax.dot_general(
        s, x, dimension_numbers=(((1,), (1,)), ((0,), (0,))),
        preferred_element_type=jnp.float32)               # (Bt, Hp, Fp)

    # new_adj[b] = S[b]^T @ adj[b] @ S[b]
    tmp = lax.dot_general(
        s, adj, dimension_numbers=(((1,), (1,)), ((0,), (0,))),
        preferred_element_type=jnp.float32)               # (Bt, Hp, N)
    new_adj = lax.dot_general(
        tmp, s, dimension_numbers=(((2,), (1,)), ((0,), (0,))),
        preferred_element_type=jnp.float32)               # (Bt, Hp, Hp)

    new_adj_ref[...] = new_adj
    new_feat_ref[...] = new_feat
    s_ref[...] = s


def graph_pool_forward(adj, x, w, b, *, block_b=None):
    """Returns (new_adj, new_feat, S); S corresponds to module.cur_S."""
    # forward() promotes 2-D inputs to a batch of one.
    if x.ndim == 2:
        x = x[None]
    if adj.ndim == 2:
        adj = adj[None]

    x = x.astype(jnp.float32)
    adj = adj.astype(jnp.float32)
    w = w.astype(jnp.float32)
    b = b.astype(jnp.float32)

    B, N, F = x.shape
    H = w.shape[1]

    # Lane-pad the feature (F) and cluster (H) axes to 128 so every matmul
    # result tile and output store is lane-dense.
    Fp = _round_up(F, LANE)
    Hp = _round_up(H, LANE)

    x_p = jnp.pad(x, ((0, 0), (0, 0), (0, Fp - F)))               # zeros: exact
    w_p = jnp.pad(w, ((0, Fp - F), (0, Hp - H)))                  # zeros: exact
    b_p = jnp.pad(b, ((0, 0), (0, Hp - H)), constant_values=NEG_BIG)

    # Batch tile: amortize per-step overhead while staying well inside VMEM.
    per_graph_bytes = 4 * (N * N + N * Fp + N * Hp + Hp * Fp + Hp * Hp)
    if block_b is None:
        budget = 24 * 1024 * 1024  # double-buffered blocks must also fit
        block_b = max(1, min(B, budget // max(per_graph_bytes, 1)))
        block_b = int(min(block_b, 8))
    Bt = int(block_b)
    Bp = _round_up(B, Bt)
    if Bp != B:
        x_p = jnp.pad(x_p, ((0, Bp - B), (0, 0), (0, 0)))
        adj_p = jnp.pad(adj, ((0, Bp - B), (0, 0), (0, 0)))
    else:
        adj_p = adj

    grid = (Bp // Bt,)

    grid_spec = pltpu.PrefetchScalarGridSpec(
        num_scalar_prefetch=0,
        grid=grid,
        in_specs=[
            pl.BlockSpec((Bt, N, Fp), lambda i: (i, 0, 0)),   # x
            pl.BlockSpec((Bt, N, N), lambda i: (i, 0, 0)),    # adj
            pl.BlockSpec((Fp, Hp), lambda i: (0, 0)),         # W (shared)
            pl.BlockSpec((1, Hp), lambda i: (0, 0)),          # b (shared)
        ],
        out_specs=[
            pl.BlockSpec((Bt, Hp, Hp), lambda i: (i, 0, 0)),  # new_adj
            pl.BlockSpec((Bt, Hp, Fp), lambda i: (i, 0, 0)),  # new_feat
            pl.BlockSpec((Bt, N, Hp), lambda i: (i, 0, 0)),   # S
        ],
    )

    # VMEM budget: double-buffered in/out blocks + shared params + headroom.
    in_bytes = Bt * 4 * (N * N + N * Fp)
    out_bytes = Bt * 4 * (Hp * Hp + Hp * Fp + N * Hp)
    param_bytes = 4 * (Fp * Hp + Hp)
    vmem_needed = 2 * (in_bytes + out_bytes) + param_bytes + (4 << 20)
    vmem_limit = int(min(64 * 1024 * 1024, max(32 * 1024 * 1024, vmem_needed)))

    flops = 2 * Bp * (N * Fp * Hp          # x @ W
                      + Hp * N * Fp        # S^T @ x
                      + Hp * N * N         # S^T @ adj
                      + Hp * N * Hp)       # (S^T adj) @ S
    transcendentals = Bp * N * Hp
    bytes_accessed = 4 * (Bp * (N * Fp + N * N + Hp * Hp + Hp * Fp + N * Hp)
                          + Fp * Hp + Hp)

    new_adj_p, new_feat_p, S_p = pl.pallas_call(
        graphpool_kernel,
        grid_spec=grid_spec,
        out_shape=(
            jax.ShapeDtypeStruct((Bp, Hp, Hp), jnp.float32),
            jax.ShapeDtypeStruct((Bp, Hp, Fp), jnp.float32),
            jax.ShapeDtypeStruct((Bp, N, Hp), jnp.float32),
        ),
        compiler_params=pltpu.CompilerParams(
            dimension_semantics=("parallel",),
            vmem_limit_bytes=vmem_limit,
        ),
        cost_estimate=pl.CostEstimate(
            flops=int(flops),
            transcendentals=int(transcendentals),
            bytes_accessed=int(bytes_accessed),
        ),
    )(x_p, adj_p, w_p, b_p)

    # Strip batch / lane padding.
    new_adj = new_adj_p[:B, :H, :H]
    new_feat = new_feat_p[:B, :H, :F]
    S = S_p[:B, :, :H]
    return new_adj, new_feat, S


def graph_pool_reference(adj, x, w, b):
    logits = jnp.einsum("bnf,fh->bnh", x, w) + b[None]
    S = jax.nn.softmax(logits, axis=-1)
    new_feat = jnp.einsum("bnh,bnf->bhf", S, x)
    new_adj = jnp.einsum("bnh,bnm,bmk->bhk", S, adj, S)
    return new_adj, new_feat, S


if __name__ == "__main__":
    B, N, F, H = 2, 16, 32, 8   # batch, nodes, input_dim, hidden_dim (clusters)

    key = jax.random.PRNGKey(0)
    kx, ka, kw, kb = jax.random.split(key, 4)

    x = jax.random.normal(kx, (B, N, F), dtype=jnp.float32)
    adj_raw = jax.random.uniform(ka, (B, N, N), dtype=jnp.float32)
    adj = ((adj_raw + jnp.swapaxes(adj_raw, -1, -2)) > 1.0).astype(jnp.float32)

    # Deterministic "net" parameters (Linear(input_dim, hidden_dim)).
    w = jax.random.normal(kw, (F, H), dtype=jnp.float32) * 0.1
    b = jax.random.normal(kb, (1, H), dtype=jnp.float32) * 0.1

    new_adj, new_feat, S = graph_pool_forward(adj, x, w, b)
    jax.block_until_ready((new_adj, new_feat, S))

    ra, rf, rs = graph_pool_reference(adj, x, w, b)
    # Tolerances loosened slightly for the approx (EUP) reciprocal in softmax.
    assert jnp.allclose(new_adj, ra, atol=5e-3, rtol=5e-3)
    assert jnp.allclose(new_feat, rf, atol=5e-3, rtol=5e-3)
    assert jnp.allclose(S, rs, atol=2e-3, rtol=2e-3)

    print("KERNEL_OK")
</pallas_src>

<mosaic_0001>
module attributes {stable_mosaic.version = 11 : i64} {
  func.func @graphpool_kernel(%arg0: i32, %arg1: memref<2x16x128xf32, #tpu.memory_space<vmem>>, %arg2: memref<2x16x16xf32, #tpu.memory_space<vmem>>, %arg3: memref<128x128xf32, #tpu.memory_space<vmem>>, %arg4: memref<1x128xf32, #tpu.memory_space<vmem>>, %arg5: memref<2x128x128xf32, #tpu.memory_space<vmem>>, %arg6: memref<2x128x128xf32, #tpu.memory_space<vmem>>, %arg7: memref<2x16x128xf32, #tpu.memory_space<vmem>>) attributes {dimension_semantics = [#tpu.dimension_semantics<parallel>], iteration_bounds = array<i64: 1>, scalar_prefetch = 0 : i64, scratch_operands = 0 : i64, tpu.core_type = #tpu.core_type<tc>, window_params = [{transform_indices = @transform_0, window_bounds = array<i64: 2, 16, 128>}, {transform_indices = @transform_1, window_bounds = array<i64: 2, 16, 16>}, {pipeline_mode = #tpu.pipeline_mode<synchronous>, transform_indices = @transform_2, window_bounds = array<i64: 128, 128>}, {pipeline_mode = #tpu.pipeline_mode<synchronous>, transform_indices = @transform_3, window_bounds = array<i64: 1, 128>}, {transform_indices = @transform_4, window_bounds = array<i64: 2, 128, 128>}, {transform_indices = @transform_5, window_bounds = array<i64: 2, 128, 128>}, {transform_indices = @transform_6, window_bounds = array<i64: 2, 16, 128>}]} {
    %c0 = arith.constant 0 : index
    %c0_0 = arith.constant 0 : index
    %c0_1 = arith.constant 0 : index
    %0 = vector.load %arg1[%c0, %c0_0, %c0_1] : memref<2x16x128xf32, #tpu.memory_space<vmem>>, vector<2x16x128xf32>
    %c0_2 = arith.constant 0 : index
    %c0_3 = arith.constant 0 : index
    %c0_4 = arith.constant 0 : index
    %1 = vector.load %arg2[%c0_2, %c0_3, %c0_4] : memref<2x16x16xf32, #tpu.memory_space<vmem>>, vector<2x16x16xf32>
    %c0_5 = arith.constant 0 : index
    %c0_6 = arith.constant 0 : index
    %2 = vector.load %arg3[%c0_5, %c0_6] : memref<128x128xf32, #tpu.memory_space<vmem>>, vector<128x128xf32>
    %c0_7 = arith.constant 0 : index
    %c0_8 = arith.constant 0 : index
    %3 = vector.load %arg4[%c0_7, %c0_8] : memref<1x128xf32, #tpu.memory_space<vmem>>, vector<1x128xf32>
    %cst = arith.constant dense<0.000000e+00> : vector<2x16x128xf32>
    %4 = tpu.matmul %0, %2, %cst {dimension_numbers = #tpu.dot_dimension_numbers<[2], [0], [0, 1], [1], [0, 0, 0, 1, 1, 1], [], []>} : vector<2x16x128xf32>, vector<128x128xf32>, vector<2x16x128xf32> -> vector<2x16x128xf32>
    %5 = vector.shape_cast %3 : vector<1x128xf32> to vector<1x1x128xf32>
    %6 = vector.broadcast %5 : vector<1x1x128xf32> to vector<2x16x128xf32>
    %7 = arith.addf %4, %6 : vector<2x16x128xf32>
    %cst_9 = arith.constant dense<0xFF800000> : vector<2x16xf32>
    %8 = vector.multi_reduction <maximumf>, %7, %cst_9 [2] : vector<2x16x128xf32> to vector<2x16xf32>
    %9 = vector.shape_cast %8 : vector<2x16xf32> to vector<2x16x1xf32>
    %10 = vector.broadcast %9 : vector<2x16x1xf32> to vector<2x16x128xf32>
    %11 = arith.subf %7, %10 : vector<2x16x128xf32>
    %12 = math.exp %11 : vector<2x16x128xf32>
    %cst_10 = arith.constant dense<0.000000e+00> : vector<2x16xf32>
    %13 = vector.multi_reduction <add>, %12, %cst_10 [2] : vector<2x16x128xf32> to vector<2x16xf32>
    %14 = vector.shape_cast %13 : vector<2x16xf32> to vector<2x16x1xf32>
    %15 = tpu.reciprocal %14 {approx = true} : vector<2x16x1xf32> -> vector<2x16x1xf32>
    %16 = vector.broadcast %15 : vector<2x16x1xf32> to vector<2x16x128xf32>
    %17 = arith.mulf %12, %16 : vector<2x16x128xf32>
    %cst_11 = arith.constant dense<0.000000e+00> : vector<2x128x128xf32>
    %18 = tpu.matmul %17, %0, %cst_11 {dimension_numbers = #tpu.dot_dimension_numbers<[1], [1], [2], [2], [0, 0, 0, 2, 1, 2], [0], [0]>} : vector<2x16x128xf32>, vector<2x16x128xf32>, vector<2x128x128xf32> -> vector<2x128x128xf32>
    %cst_12 = arith.constant dense<0.000000e+00> : vector<2x128x16xf32>
    %19 = tpu.matmul %17, %1, %cst_12 {dimension_numbers = #tpu.dot_dimension_numbers<[1], [1], [2], [2], [0, 0, 0, 2, 1, 2], [0], [0]>} : vector<2x16x128xf32>, vector<2x16x16xf32>, vector<2x128x16xf32> -> vector<2x128x16xf32>
    %cst_13 = arith.constant dense<0.000000e+00> : vector<2x128x128xf32>
    %20 = tpu.matmul %19, %17, %cst_13 {dimension_numbers = #tpu.dot_dimension_numbers<[2], [1], [1], [2], [0, 0, 0, 1, 1, 2], [0], [0]>} : vector<2x128x16xf32>, vector<2x16x128xf32>, vector<2x128x128xf32> -> vector<2x128x128xf32>
    %c0_14 = arith.constant 0 : index
    %c0_15 = arith.constant 0 : index
    %c0_16 = arith.constant 0 : index
    %21 = vector.load %arg5[%c0_14, %c0_15, %c0_16] : memref<2x128x128xf32, #tpu.memory_space<vmem>>, vector<2x128x128xf32>
    tpu.vector_store %arg5[%c0_14, %c0_15, %c0_16], %20 {strides = array<i32>} : memref<2x128x128xf32, #tpu.memory_space<vmem>>, vector<2x128x128xf32>,
    %c0_17 = arith.constant 0 : index
    %c0_18 = arith.constant 0 : index
    %c0_19 = arith.constant 0 : index
    %22 = vector.load %arg6[%c0_17, %c0_18, %c0_19] : memref<2x128x128xf32, #tpu.memory_space<vmem>>, vector<2x128x128xf32>
    tpu.vector_store %arg6[%c0_17, %c0_18, %c0_19], %18 {strides = array<i32>} : memref<2x128x128xf32, #tpu.memory_space<vmem>>, vector<2x128x128xf32>,
    %c0_20 = arith.constant 0 : index
    %c0_21 = arith.constant 0 : index
    %c0_22 = arith.constant 0 : index
    %23 = vector.load %arg7[%c0_20, %c0_21, %c0_22] : memref<2x16x128xf32, #tpu.memory_space<vmem>>, vector<2x16x128xf32>
    tpu.vector_store %arg7[%c0_20, %c0_21, %c0_22], %17 {strides = array<i32>} : memref<2x16x128xf32, #tpu.memory_space<vmem>>, vector<2x16x128xf32>,
    return
  }
  func.func @transform_0(%arg0: i32) -> (i32, i32, i32) {
    %c0_i32 = arith.constant 0 : i32
    %c0_i32_0 = arith.constant 0 : i32
    %c0_i32_1 = arith.constant 0 : i32
    return %arg0, %c0_i32, %c0_i32_0 : i32, i32, i32
  }
  func.func @transform_1(%arg0: i32) -> (i32, i32, i32) {
    %c0_i32 = arith.constant 0 : i32
    %c0_i32_0 = arith.constant 0 : i32
    %c0_i32_1 = arith.constant 0 : i32
    return %arg0, %c0_i32, %c0_i32_0 : i32, i32, i32
  }
  func.func @transform_2(%arg0: i32) -> (i32, i32) {
    %c0_i32 = arith.constant 0 : i32
    %c0_i32_0 = arith.constant 0 : i32
    %c0_i32_1 = arith.constant 0 : i32
    return %c0_i32, %c0_i32_0 : i32, i32
  }
  func.func @transform_3(%arg0: i32) -> (i32, i32) {
    %c0_i32 = arith.constant 0 : i32
    %c0_i32_0 = arith.constant 0 : i32
    %c0_i32_1 = arith.constant 0 : i32
    return %c0_i32, %c0_i32_0 : i32, i32
  }
  func.func @transform_4(%arg0: i32) -> (i32, i32, i32) {
    %c0_i32 = arith.constant 0 : i32
    %c0_i32_0 = arith.constant 0 : i32
    %c0_i32_1 = arith.constant 0 : i32
    return %arg0, %c0_i32, %c0_i32_0 : i32, i32, i32
  }
  func.func @transform_5(%arg0: i32) -> (i32, i32, i32) {
    %c0_i32 = arith.constant 0 : i32
    %c0_i32_0 = arith.constant 0 : i32
    %c0_i32_1 = arith.constant 0 : i32
    return %arg0, %c0_i32, %c0_i32_0 : i32, i32, i32
  }
  func.func @transform_6(%arg0: i32) -> (i32, i32, i32) {
    %c0_i32 = arith.constant 0 : i32
    %c0_i32_0 = arith.constant 0 : i32
    %c0_i32_1 = arith.constant 0 : i32
    return %arg0, %c0_i32, %c0_i32_0 : i32, i32, i32
  }
}

</mosaic_0001>

<bundles_post_ra>
// kernel: tpu_custom_call.1
= control target key start
LH: loop header
LB: loop body
LE: loop exit
PB: predicated region body
PF: predicated region fallthrough
CT: control target
= control target key end

     0   :  { %12 = vsyncpa [#allocation3], 0  ;;  %s2271_s0 = inlined_call_operand.hbm [shape: f32[2,16,128], index: 0, kind: input, shape index: {}]   ;;  %s2272_s1 = inlined_call_operand.hbm [shape: f32[2,16,16], index: 1, kind: input, shape index: {}]   ;;  %s2273_s2 = inlined_call_operand.hbm [shape: f32[128,128], index: 2, kind: input, shape index: {}]   ;;  %s2274_s3 = inlined_call_operand.vmem [shape: f32[1,128], index: 3, kind: input, shape index: {}]   ;;  %s2275_s4 = inlined_call_operand.hbm [shape: f32[2,128,128], index: 4, kind: output, shape index: {0}]   ;;  %s2276_s5 = inlined_call_operand.hbm [shape: f32[2,128,128], index: 5, kind: output, shape index: {1}]   ;;  %s2277_s6 = inlined_call_operand.hbm [shape: f32[2,16,128], index: 6, kind: output, shape index: {2}]  }
   0x1   :  { %13 = vsyncpa [#allocation6], 0 }
   0x2   :  { %14 = vsyncpa [#allocation4], 0 }
   0x3   :  { %15 = vsyncpa [#allocation10], 0  ;;  %s2047_s21 = smov [#allocation5]   ;;  %s2048_s23 = smov [#allocation2]  }
   0x4   :  { %s33_s22 = sshll.u32 %s2047_s21, 4  ;;  %s21_s24 = sshll.u32 %s2048_s23, 4  ;;  %s34_s22 = int_to_ptr.vmem [resolvable:$true] %s33_s22  ;;  %s22_s24 = int_to_ptr.vmem [resolvable:$true] %s21_s24 }
   0x5   :  { %s1927_s25 = scalar_lea.vmem %s34_s22, 512  ;;  %p1932_p1 = scmp.lt.s32.totalorder %s34_s22, %s34_s22 }
   0x6   :  { %p1928_p0 = scmp.ne.s32.totalorder %s34_s22, %s1927_s25  ;;  %p1933_p2 = scmp.lt.s32.totalorder %s1927_s25, %s1927_s25 }
   0x8   :  { %p1934_p3 = por %p1933_p2, %p1932_p1 }
   0xa   :  { %p1935_p4 = pnand %p1934_p3, %p1928_p0 }
   0xc   :  { %1938 = shalt.err (!%p1935_p4)
}
   0xd   :  { %s2049_s26 = smov 128   ;;  %s2050_s27 = smov 8  }
   0xe   :  { %39 = dma.hbm_to_vmem [thread:$0]  %s2272_s1, 512, %s34_s22, [#allocation6], %s2049_s26, %s2049_s26, %s2050_s27  }
   0xf   :  { %s1947_s30 = scalar_lea.vmem %s22_s24, 512  ;;  %p1952_p6 = scmp.lt.s32.totalorder %s22_s24, %s22_s24 }
  0x10   :  { %p1948_p5 = scmp.ne.s32.totalorder %s22_s24, %s1947_s30  ;;  %p1953_p7 = scmp.lt.s32.totalorder %s1947_s30, %s1947_s30 }
  0x12   :  { %p1954_p8 = por %p1953_p7, %p1952_p6 }
  0x14   :  { %p1955_p9 = pnand %p1954_p8, %p1948_p5 }
  0x16   :  { %1958 = shalt.err (!%p1955_p9)
}
  0x17   :  { %27 = dma.hbm_to_vmem [thread:$0]  %s2271_s0, 512, %s22_s24, [#allocation3], %s2049_s26, %s2049_s26, %s2050_s27  }
  0x18   :  { %s2051_s9 = smov [#allocation7]  }
  0x19   :  { %s45_s10 = sshll.u32 %s2051_s9, 4  ;;  %s46_s10 = int_to_ptr.vmem [resolvable:$true] %s45_s10 }
  0x1a   :  { %s1967_s11 = scalar_lea.vmem %s46_s10, 2048  ;;  %p1972_p11 = scmp.lt.s32.totalorder %s46_s10, %s46_s10 }
  0x1b   :  { %p1968_p10 = scmp.ne.s32.totalorder %s46_s10, %s1967_s11  ;;  %p1973_p12 = scmp.lt.s32.totalorder %s1967_s11, %s1967_s11 }
  0x1d   :  { %p1974_p13 = por %p1973_p12, %p1972_p11 }
  0x1f   :  { %p1975_p0 = pnand %p1974_p13, %p1968_p10 }
  0x21   :  { %1978 = shalt.err (!%p1975_p0)
}
  0x22   :  { %51 = dma.hbm_to_vmem [thread:$0]  %s2273_s2, 2048, %s46_s10, [#allocation6], %s2049_s26, %s2049_s26, %s2050_s27  }
  0x23   :  { %2039 = dma.done.wait [#allocation3], 512  }
  0x24   :  { %2040 = vsyncadd [#allocation3], 4294966784 }
  0x25   :  { %2041 = dma.done.wait [#allocation6], 2560  }
  0x26   :  { %2042 = vsyncadd [#allocation6], 4294964736  ;;  %v86_v0 = vld [vmem:[#allocation7 + $0x78] sm:$0xff]  ;;  %v85_v1 = vld [vmem:[#allocation7 + $0x70] sm:$0xff]  ;;  %vm247_vm0 = vcmask 130048  }
  0x27   :  { %1684 = vmatprep.subr.mxu0 %v86_v0  ;;  %v84_v2 = vld [vmem:[#allocation7 + $0x68] sm:$0xff]  ;;  %v83_v3 = vld [vmem:[#allocation7 + $0x60] sm:$0xff]  ;;  %v82_v5 = vld [vmem:[#allocation7 + $0x58] sm:$0xff] }
  0x28   :  { %1685 = vmatpush3.msra.mxu0 %v86_v0  ;;  %v63_v4 = vld [vmem:[#allocation2] sm:$0xff]  ;;  %v64_v6 = vld [vmem:[#allocation2 + $0x8] sm:$0xff]  ;;  %v81_v7 = vld [vmem:[#allocation7 + $0x50] sm:$0xff] }
  0x29   :  { %1686 = vmatprep.subr.mxu0 %v85_v1  ;;  %1716 = vmatprep.mubr.f32.mxu0 %v63_v4  ;;  %v80_v8 = vld [vmem:[#allocation7 + $0x48] sm:$0xff]  ;;  %v2108_v9 = vld [vmem:[#allocation2 + $0x18] sm:$0xff]  ;;  %v79_v10 = vld [vmem:[#allocation7 + $0x40] sm:$0xff] }
  0x2a   :  { %1687 = vmatpush3.msra.mxu0 %v85_v1  ;;  %1890 = vmatprep.subr.mxu1 %v64_v6  ;;  %v78_v11 = vld [vmem:[#allocation7 + $0x38] sm:$0xff]  ;;  %v77_v12 = vld [vmem:[#allocation7 + $0x30] sm:$0xff]  ;;  %v76_v13 = vld [vmem:[#allocation7 + $0x28] sm:$0xff] }
  0x2b   :  { %1688 = vmatprep.subr.mxu0 %v84_v2  ;;  %1892 = vmatpush3.msra.mxu1 %v64_v6  ;;  %v75_v14 = vld [vmem:[#allocation7 + $0x20] sm:$0xff]  ;;  %v74_v15 = vld [vmem:[#allocation7 + $0x18] sm:$0xff]  ;;  %v73_v16 = vld [vmem:[#allocation7 + $0x10] sm:$0xff] }
  0x2c   :  { %1689 = vmatpush3.msra.mxu0 %v84_v2  ;;  %1891 = vmatprep.subr.mxu1 %v63_v4  ;;  %v72_v17 = vld [vmem:[#allocation7 + $0x8] sm:$0xff]  ;;  %v71_v18 = vld [vmem:[#allocation7] sm:$0xff]  ;;  %v2111_v19 = vld [vmem:[#allocation2 + $0x10] sm:$0xff] }
  0x2d   :  { %1690 = vmatprep.subr.mxu0 %v83_v3  ;;  %1893 = vmatpush3.msra.mxu1 %v63_v4  ;;  %v1459_v21 = vld [vmem:[%s2274_s3] ss:$0 sm:$0xff]  ;;  %v68_v51 = vld [vmem:[#allocation5 + $0x8] sm:$0xff]  ;;  %s2052_s3 = smov [#allocation9]  }
  0x2e   :  { %1691 = vmatpush3.msra.mxu0 %v83_v3  ;;  %1750 = vmatprep.subr.mxu1 %v2108_v9  ;;  %v67_v60 = vld [vmem:[#allocation5] sm:$0xff]  ;;  %s1427_s13 = sshll.u32 %s2052_s3, 4  ;;  %s1428_s13 = int_to_ptr.vmem [resolvable:$true] %s1427_s13 }
  0x2f   :  { %1692 = vmatprep.subr.mxu0 %v82_v5  ;;  %s1979_s14 = scalar_lea.vmem %s1428_s13, 4096  ;;  %p1984_p2 = scmp.lt.s32.totalorder %s1428_s13, %s1428_s13 }
  0x30   :  { %1693 = vmatpush3.msra.mxu0 %v82_v5  ;;  %p1980_p1 = scmp.ne.s32.totalorder %s1428_s13, %s1979_s14  ;;  %p1985_p3 = scmp.lt.s32.totalorder %s1979_s14, %s1979_s14 }
  0x31   :  { %1694 = vmatprep.subr.mxu0 %v81_v7 }
  0x32   :  { %1695 = vmatpush3.msra.mxu0 %v81_v7  ;;  %p1986_p4 = por %p1985_p3, %p1984_p2 }
  0x33   :  { %1696 = vmatprep.subr.mxu0 %v80_v8 }
  0x34   :  { %1697 = vmatpush3.msra.mxu0 %v80_v8  ;;  %p1987_p5 = pnand %p1986_p4, %p1980_p1 }
  0x35   :  { %1698 = vmatprep.subr.mxu0 %v79_v10 }
  0x36   :  { %1699 = vmatpush3.msra.mxu0 %v79_v10  ;;  %v70_v10 = vld [vmem:[#allocation5 + $0x18] sm:$0xff] }
  0x37   :  { %1700 = vmatprep.subr.mxu0 %v78_v11 }
  0x38   :  { %1701 = vmatpush3.msra.mxu0 %v78_v11 }
  0x39   :  { %1702 = vmatprep.subr.mxu0 %v77_v12 }
  0x3a   :  { %1703 = vmatpush3.msra.mxu0 %v77_v12 }
  0x3b   :  { %1704 = vmatprep.subr.mxu0 %v76_v13 }
  0x3c   :  { %1705 = vmatpush3.msra.mxu0 %v76_v13 }
  0x3d   :  { %1706 = vmatprep.subr.mxu0 %v75_v14 }
  0x3e   :  { %1707 = vmatpush3.msra.mxu0 %v75_v14 }
  0x3f   :  { %1708 = vmatprep.subr.mxu0 %v74_v15 }
  0x40   :  { %1709 = vmatpush3.msra.mxu0 %v74_v15 }
  0x41   :  { %1710 = vmatprep.subr.mxu0 %v73_v16 }
  0x42   :  { %1711 = vmatpush3.msra.mxu0 %v73_v16 }
  0x43   :  { %1712 = vmatprep.subr.mxu0 %v72_v17 }
  0x44   :  { %1713 = vmatpush3.msra.mxu0 %v72_v17 }
  0x45   :  { %1714 = vmatprep.subr.mxu0 %v71_v18 }
  0x46   :  { %1715 = vmatpush3.msra.mxu0 %v71_v18 }
  0x47   :  { %1717 = vmatmul.mubr.f32.vlgmr.msra.gmra.mxu0 %v64_v6  ;;  %1722 = vmatprep.subr.mxu0 %v64_v6 }
  0x48   :  { %1719 = vmatprep.mubr.f32.mxu0 %v2111_v19  ;;  %1723 = vmatpush3.msra.mxu0 %v64_v6 }
  0x49   :  { %1724 = vmatprep.subr.mxu0 %v63_v4 }
  0x4a   :  { %1725 = vmatpush3.msra.mxu0 %v63_v4 }
  0x4b   :  { %1720 = vmatmul.mubr.f32.gmra.mxu0 %v2108_v9  ;;  %1778 = vmatprep.subr.mxu0 %v68_v51 }
 0x107   :  { %v1718_v20 = vpop.f32.mrf.mxu0 }
 0x108   :  { %v166_v26 = vadd.f32 %v1718_v20, %v1459_v21 }
 0x109   :  { %v160_v22 = vpop.f32.mrf.mxu0 }
 0x10a   :  { %v161_v23 = vadd.f32 %v1459_v21, %v160_v22 }
 0x10b   :  { %v1721_v24 = vpop.f32.mrf.mxu0 }
 0x10c   :  { %179 = vmax.xlane.f32.xlu0 %v161_v23  ;;  %v176_v28 = vadd.f32 %v1721_v24, %v1459_v21 }
 0x10d   :  { %v170_v25 = vpop.f32.mrf.mxu0 }
 0x10e   :  { %v171_v27 = vadd.f32 %v1459_v21, %v170_v25 }
 0x110   :  { %183 = vmax.xlane.f32.xlu1 %v171_v27  ;;  %181 = vmax.xlane.f32.xlu0 %v166_v26 }
 0x114   :  { %185 = vmax.xlane.f32.xlu1 %v176_v28 }
 0x195   :  { %v180_v29 = vpop.xlane.xlu0 %179 }
 0x196   :  { %v187_v30 = vsub.f32 %v161_v23, %v180_v29  ;;  %v69_v23 = vld [vmem:[#allocation5 + $0x10] sm:$0xff] }
 0x198   :  { %v191_v31 = vmul.f32 1.442695, %v187_v30 }
 0x199   :  { %v184_v32 = vpop.xlane.xlu1 %183  ;;  %v182_v33 = vpop.xlane.xlu0 %181 }
 0x19a   :  { %1903 = vpow2.f32 %v191_v31  ;;  %v189_v34 = vsub.f32 %v171_v27, %v184_v32  ;;  %v188_v35 = vsub.f32 %v166_v26, %v182_v33 }
 0x19c   :  { %v195_v36 = vmul.f32 1.442695, %v189_v34  ;;  %v193_v37 = vmul.f32 1.442695, %v188_v35 }
 0x19d   :  { %v186_v38 = vpop.xlane.xlu1 %185 }
 0x19e   :  { %1905 = vpow2.f32 %v195_v36  ;;  %v190_v39 = vsub.f32 %v176_v28, %v186_v38 }
 0x19f   :  { %1907 = vpow2.f32 %v193_v37 }
 0x1a0   :  { %v197_v40 = vmul.f32 1.442695, %v190_v39 }
 0x1a2   :  { %1909 = vpow2.f32 %v197_v40 }
 0x1a7   :  { %v1904_v41 = vpop.eup %1903 }
 0x1a8   :  { %199 = vadd.xlane.f32.xlu0 %v1904_v41 }
 0x1ab   :  { %v1906_v42 = vpop.eup %1905 }
 0x1ac   :  { %v1908_v43 = vpop.eup %1907  ;;  %203 = vadd.xlane.f32.xlu0 %v1906_v42 }
 0x1ad   :  { %201 = vadd.xlane.f32.xlu1 %v1908_v43 }
 0x1af   :  { %v1910_v44 = vpop.eup %1909 }
 0x1b1   :  { %205 = vadd.xlane.f32.xlu1 %v1910_v44 }
 0x231   :  { %v200_v45 = vpop.xlane.xlu0 %199 }
 0x232   :  { %1911 = vrcp.f32 %v200_v45 }
 0x235   :  { %v204_v46 = vpop.xlane.xlu0 %203 }
 0x236   :  { %v202_v47 = vpop.xlane.xlu1 %201  ;;  %1913 = vrcp.f32 %v204_v46 }
 0x237   :  { %1915 = vrcp.f32 %v202_v47 }
 0x23a   :  { %v206_v48 = vpop.xlane.xlu1 %205 }
 0x23b   :  { %1917 = vrcp.f32 %v206_v48 }
 0x23f   :  { %v1912_v49 = vpop.eup %1911 }
 0x240   :  { %v211_v50 = vmul.f32 %v1912_v49, %v1904_v41 }
 0x242   :  { %215 = vxpose.xlu0.b32.start [1/2] (short) %v211_v50, 128  ;;  %1406 = vst [vmem:[#allocation11] sm:$0xff] %v211_v50 }
 0x243   :  { %v1914_v52 = vpop.eup %1913 }
 0x244   :  { %v1916_v53 = vpop.eup %1915  ;;  %v2118_v54 = vmul.f32 %v1914_v52, %v1906_v42 }
 0x245   :  { %v212_v55 = vmul.f32 %v1916_v53, %v1908_v43 }
 0x246   :  { %441 = vxpose.xlu1.b32.start [1/2] (short) %v2118_v54, 128  ;;  %1408 = vst [vmem:[#allocation11 + $0x10] sm:$0xff] %v2118_v54 }
 0x247   :  { %216 = vxpose.xlu0.b32.end [2/2] (short) %v212_v55, 128  ;;  %1407 = vst [vmem:[#allocation11 + $0x8] sm:$0xff] %v212_v55 }
 0x248   :  { %v1918_v56 = vpop.eup %1917 }
 0x249   :  { %v2122_v57 = vmul.f32 %v1918_v56, %v1910_v44 }
 0x24b   :  { %442 = vxpose.xlu1.b32.end [2/2] (short) %v2122_v57, 128  ;;  %1409 = vst [vmem:[#allocation11 + $0x18] sm:$0xff] %v2122_v57 }
 0x2bf   :  { %v231_v58 = vpop.trf.xlu0 }
 0x2c0   :  { %1726 = vmatprep.mubr.msk.f32.mxu0 %vm247_vm0, %v231_v58 }
 0x2c3   :  { %v232_v59 = vpop.trf.xlu0  ;;  %v2127_v61 = vpop.trf.xlu1 }
 0x2c4   :  { %1727 = vmatmul.mubr.msk.f32.vlgmr.msra.gmra.mxu0 %vm247_vm0, %v232_v59 }
 0x2c5   :  { %1779 = vmatpush3.msra.mxu0 %v68_v51 }
 0x2c6   :  { %1780 = vmatprep.subr.mxu0 %v67_v60 }
 0x2c7   :  { %1781 = vmatpush3.msra.mxu0 %v67_v60  ;;  %v233_v62 = vpop.trf.xlu0  ;;  %v2130_v63 = vpop.trf.xlu1 }
 0x2c8   :  { %1834 = vmatprep.subr.mxu0 %v212_v55  ;;  %1729 = vmatprep.mubr.msk.f32.mxu0 %vm247_vm0, %v233_v62 }
 0x2cb   :  { %v234_v0 = vpop.trf.xlu0  ;;  %v2133_v1 = vpop.trf.xlu1 }
 0x2cc   :  { %1730 = vmatmul.mubr.msk.f32.gmra.mxu0 %vm247_vm0, %v234_v0 }
 0x2cf   :  { %v235_v2 = vpop.trf.xlu0  ;;  %v2137_v3 = vpop.trf.xlu1 }
 0x2d0   :  { %1732 = vmatprep.mubr.msk.f32.mxu0 %vm247_vm0, %v235_v2 }
 0x2d3   :  { %v236_v4 = vpop.trf.xlu0  ;;  %v2141_v6 = vpop.trf.xlu1 }
 0x2d4   :  { %1733 = vmatmul.mubr.msk.f32.gmra.mxu0 %vm247_vm0, %v236_v4 }
 0x2d5   :  { %1782 = vmatprep.mubr.msk.f32.mxu0 %vm247_vm0, %v231_v58 }
 0x2d7   :  { %v237_v5 = vpop.trf.xlu0  ;;  %v2150_v8 = vpop.trf.xlu1 }
 0x2d8   :  { %1735 = vmatprep.mubr.msk.f32.mxu1 %vm247_vm0, %v237_v5  ;;  %1783 = vmatmul.mubr.msk.f32.vlgmr.msra.gmra.mxu0 %vm247_vm0, %v232_v59 }
 0x2d9   :  { %1835 = vmatpush3.msra.mxu0 %v212_v55  ;;  %1785 = vmatprep.mubr.msk.f32.mxu0 %vm247_vm0, %v233_v62 }
 0x2da   :  { %1836 = vmatprep.subr.mxu0 %v211_v50 }
 0x2db   :  { %1837 = vmatpush3.msra.mxu0 %v211_v50  ;;  %v238_v7 = vpop.trf.xlu0  ;;  %v463_v13 = vpop.trf.xlu1 }
 0x2dc   :  { %1736 = vmatmul.mubr.msk.f32.vlgmr.msra.gmra.mxu1 %vm247_vm0, %v238_v7  ;;  %1786 = vmatmul.mubr.msk.f32.gmra.mxu0 %vm247_vm0, %v234_v0 }
 0x2dd   :  { %1788 = vmatprep.mubr.msk.f32.mxu0 %vm247_vm0, %v235_v2  ;;  %1751 = vmatpush3.msra.mxu1 %v2108_v9 }
 0x2de   :  { %1752 = vmatprep.subr.mxu1 %v2111_v19 }
 0x2df   :  { %v239_v11 = vpop.trf.xlu0  ;;  %1753 = vmatpush3.msra.mxu1 %v2111_v19  ;;  %v464_v14 = vpop.trf.xlu1 }
 0x2e0   :  { %1738 = vmatprep.mubr.msk.f32.mxu1 %vm247_vm0, %v239_v11  ;;  %1789 = vmatmul.mubr.msk.f32.gmra.mxu0 %vm247_vm0, %v236_v4 }
 0x2e1   :  { %1791 = vmatprep.mubr.msk.f32.mxu0 %vm247_vm0, %v237_v5  ;;  %1806 = vmatprep.subr.mxu1 %v70_v10 }
 0x2e3   :  { %v240_v12 = vpop.trf.xlu0  ;;  %v465_v17 = vpop.trf.xlu1 }
 0x2e4   :  { %1739 = vmatmul.mubr.msk.f32.gmra.mxu1 %vm247_vm0, %v240_v12  ;;  %1792 = vmatmul.mubr.msk.f32.gmra.mxu0 %vm247_vm0, %v238_v7 }
 0x2e5   :  { %1794 = vmatprep.mubr.msk.f32.mxu0 %vm247_vm0, %v239_v11 }
 0x2e7   :  { %v241_v9 = vpop.trf.xlu0  ;;  %v466_v19 = vpop.trf.xlu1 }
 0x2e8   :  { %1741 = vmatprep.mubr.msk.f32.mxu1 %vm247_vm0, %v241_v9  ;;  %1795 = vmatmul.mubr.msk.f32.gmra.mxu0 %vm247_vm0, %v240_v12 }
 0x2e9   :  { %1797 = vmatprep.mubr.msk.f32.mxu0 %vm247_vm0, %v241_v9 }
 0x2eb   :  { %v242_v15 = vpop.trf.xlu0  ;;  %v467_v22 = vpop.trf.xlu1 }
 0x2ec   :  { %1742 = vmatmul.mubr.msk.f32.gmra.mxu1 %vm247_vm0, %v242_v15  ;;  %1798 = vmatmul.mubr.msk.f32.gmra.mxu0 %vm247_vm0, %v242_v15 }
 0x2ef   :  { %v243_v16 = vpop.trf.xlu0  ;;  %v468_v24 = vpop.trf.xlu1 }
 0x2f0   :  { %1744 = vmatprep.mubr.msk.f32.mxu1 %vm247_vm0, %v243_v16  ;;  %1800 = vmatprep.mubr.msk.f32.mxu0 %vm247_vm0, %v243_v16 }
 0x2f3   :  { %v244_v18 = vpop.trf.xlu0  ;;  %v469_v25 = vpop.trf.xlu1 }
 0x2f4   :  { %1745 = vmatmul.mubr.msk.f32.gmra.mxu1 %vm247_vm0, %v244_v18  ;;  %1801 = vmatmul.mubr.msk.f32.gmra.mxu0 %vm247_vm0, %v244_v18 }
 0x2f7   :  { %v245_v20 = vpop.trf.xlu0  ;;  %v470_v26 = vpop.trf.xlu1 }
 0x2f8   :  { %1747 = vmatprep.mubr.msk.f32.mxu1 %vm247_vm0, %v245_v20  ;;  %1803 = vmatprep.mubr.msk.f32.mxu0 %vm247_vm0, %v245_v20 }
 0x2fb   :  { %v246_v21 = vpop.trf.xlu0  ;;  %v471_v27 = vpop.trf.xlu1 }
 0x2fc   :  { %1748 = vmatmul.mubr.msk.f32.gmra.mxu1 %vm247_vm0, %v246_v21  ;;  %1804 = vmatmul.mubr.msk.f32.gmra.mxu0 %vm247_vm0, %v246_v21 }
 0x2fd   :  { %1754 = vmatprep.mubr.msk.f32.mxu1 %vm247_vm0, %v2127_v61 }
 0x2ff   :  { %v472_v28 = vpop.trf.xlu1 }
 0x300   :  { %1755 = vmatmul.mubr.msk.f32.vlgmr.msra.gmra.mxu1 %vm247_vm0, %v2130_v63 }
 0x301   :  { %1807 = vmatpush3.msra.mxu1 %v70_v10  ;;  %1757 = vmatprep.mubr.msk.f32.mxu1 %vm247_vm0, %v2133_v1 }
 0x302   :  { %1808 = vmatprep.subr.mxu1 %v69_v23 }
 0x303   :  { %1809 = vmatpush3.msra.mxu1 %v69_v23 }
 0x304   :  { %1862 = vmatprep.subr.mxu1 %v2122_v57  ;;  %1758 = vmatmul.mubr.msk.f32.gmra.mxu1 %vm247_vm0, %v2137_v3 }
 0x305   :  { %1760 = vmatprep.mubr.msk.f32.mxu1 %vm247_vm0, %v2141_v6 }
 0x308   :  { %1761 = vmatmul.mubr.msk.f32.gmra.mxu1 %vm247_vm0, %v2150_v8 }
 0x309   :  { %1763 = vmatprep.mubr.msk.f32.mxu1 %vm247_vm0, %v463_v13 }
 0x30c   :  { %1764 = vmatmul.mubr.msk.f32.gmra.mxu1 %vm247_vm0, %v464_v14 }
 0x30d   :  { %1766 = vmatprep.mubr.msk.f32.mxu1 %vm247_vm0, %v465_v17 }
 0x310   :  { %1767 = vmatmul.mubr.msk.f32.gmra.mxu1 %vm247_vm0, %v466_v19 }
 0x311   :  { %1769 = vmatprep.mubr.msk.f32.mxu1 %vm247_vm0, %v467_v22 }
 0x314   :  { %1770 = vmatmul.mubr.msk.f32.gmra.mxu1 %vm247_vm0, %v468_v24 }
 0x315   :  { %1772 = vmatprep.mubr.msk.f32.mxu1 %vm247_vm0, %v469_v25 }
 0x318   :  { %1773 = vmatmul.mubr.msk.f32.gmra.mxu1 %vm247_vm0, %v470_v26 }
 0x319   :  { %1775 = vmatprep.mubr.msk.f32.mxu1 %vm247_vm0, %v471_v27 }
 0x31c   :  { %1776 = vmatmul.mubr.msk.f32.gmra.mxu1 %vm247_vm0, %v472_v28 }
 0x31d   :  { %1810 = vmatprep.mubr.msk.f32.mxu1 %vm247_vm0, %v2127_v61 }
 0x320   :  { %1811 = vmatmul.mubr.msk.f32.vlgmr.msra.gmra.mxu1 %vm247_vm0, %v2130_v63 }
 0x321   :  { %1863 = vmatpush3.msra.mxu1 %v2122_v57  ;;  %1813 = vmatprep.mubr.msk.f32.mxu1 %vm247_vm0, %v2133_v1 }
 0x322   :  { %1864 = vmatprep.subr.mxu1 %v2118_v54 }
 0x323   :  { %1865 = vmatpush3.msra.mxu1 %v2118_v54 }
 0x324   :  { %1814 = vmatmul.mubr.msk.f32.gmra.mxu1 %vm247_vm0, %v2137_v3 }
 0x325   :  { %1816 = vmatprep.mubr.msk.f32.mxu1 %vm247_vm0, %v2141_v6 }
 0x328   :  { %1817 = vmatmul.mubr.msk.f32.gmra.mxu1 %vm247_vm0, %v2150_v8 }
 0x329   :  { %1819 = vmatprep.mubr.msk.f32.mxu1 %vm247_vm0, %v463_v13 }
 0x32c   :  { %1820 = vmatmul.mubr.msk.f32.gmra.mxu1 %vm247_vm0, %v464_v14 }
 0x32d   :  { %1822 = vmatprep.mubr.msk.f32.mxu1 %vm247_vm0, %v465_v17 }
 0x330   :  { %1823 = vmatmul.mubr.msk.f32.gmra.mxu1 %vm247_vm0, %v466_v19 }
 0x331   :  { %1825 = vmatprep.mubr.msk.f32.mxu1 %vm247_vm0, %v467_v22 }
 0x334   :  { %1826 = vmatmul.mubr.msk.f32.gmra.mxu1 %vm247_vm0, %v468_v24 }
 0x335   :  { %1828 = vmatprep.mubr.msk.f32.mxu1 %vm247_vm0, %v469_v25 }
 0x338   :  { %1829 = vmatmul.mubr.msk.f32.gmra.mxu1 %vm247_vm0, %v470_v26 }
 0x339   :  { %1831 = vmatprep.mubr.msk.f32.mxu1 %vm247_vm0, %v471_v27 }
 0x33c   :  { %1832 = vmatmul.mubr.msk.f32.gmra.mxu1 %vm247_vm0, %v472_v28 }
 0x384   :  { %v1728_v29 = vpop.f32.mrf.mxu0 }
 0x385   :  { %1375 = vst [vmem:[#allocation9 + $0x8] sm:$0xff] %v1728_v29 }
 0x386   :  { %v362_v30 = vpop.f32.mrf.mxu0 }
 0x387   :  { %1374 = vst [vmem:[#allocation9] sm:$0xff] %v362_v30 }
 0x38c   :  { %v1731_v31 = vpop.f32.mrf.mxu0 }
 0x38d   :  { %1377 = vst [vmem:[#allocation9 + $0x18] sm:$0xff] %v1731_v31 }
 0x38e   :  { %v372_v32 = vpop.f32.mrf.mxu0 }
 0x38f   :  { %1376 = vst [vmem:[#allocation9 + $0x10] sm:$0xff] %v372_v32 }
 0x394   :  { %v1734_v33 = vpop.f32.mrf.mxu0 }
 0x395   :  { %1379 = vst [vmem:[#allocation9 + $0x28] sm:$0xff] %v1734_v33 }
 0x396   :  { %v382_v34 = vpop.f32.mrf.mxu0 }
 0x397   :  { %1378 = vst [vmem:[#allocation9 + $0x20] sm:$0xff] %v382_v34 }
 0x398   :  { %v1784_v35 = vpop.f32.mrf.mxu0 }
 0x39a   :  { %v732_v36 = vpop.f32.mrf.mxu0 }
 0x39b   :  { %1838 = vmatprep.mubr.msk.f32.mxu0 %vm247_vm0, %v732_v36 }
 0x39c   :  { %v1737_v37 = vpop.f32.mrf.mxu1  ;;  %v1787_v38 = vpop.f32.mrf.mxu0  ;;  %1839 = vmatmul.mubr.msk.f32.vlgmr.msra.gmra.mxu0 %vm247_vm0, %v1784_v35 }
 0x39d   :  { %1381 = vst [vmem:[#allocation9 + $0x38] sm:$0xff] %v1737_v37 }
 0x39e   :  { %v392_v39 = vpop.f32.mrf.mxu1  ;;  %v742_v40 = vpop.f32.mrf.mxu0 }
 0x39f   :  { %1380 = vst [vmem:[#allocation9 + $0x30] sm:$0xff] %v392_v39  ;;  %1841 = vmatprep.mubr.msk.f32.mxu0 %vm247_vm0, %v742_v40 }
 0x3a0   :  { %v1790_v41 = vpop.f32.mrf.mxu0  ;;  %1842 = vmatmul.mubr.msk.f32.gmra.mxu0 %vm247_vm0, %v1787_v38 }
 0x3a2   :  { %v752_v42 = vpop.f32.mrf.mxu0 }
 0x3a3   :  { %1844 = vmatprep.mubr.msk.f32.mxu0 %vm247_vm0, %v752_v42 }
 0x3a4   :  { %v1740_v43 = vpop.f32.mrf.mxu1  ;;  %v1793_v44 = vpop.f32.mrf.mxu0  ;;  %1845 = vmatmul.mubr.msk.f32.gmra.mxu0 %vm247_vm0, %v1790_v41 }
 0x3a5   :  { %1383 = vst [vmem:[#allocation9 + $0x48] sm:$0xff] %v1740_v43 }
 0x3a6   :  { %v402_v45 = vpop.f32.mrf.mxu1  ;;  %v762_v46 = vpop.f32.mrf.mxu0 }
 0x3a7   :  { %1382 = vst [vmem:[#allocation9 + $0x40] sm:$0xff] %v402_v45  ;;  %1847 = vmatprep.mubr.msk.f32.mxu0 %vm247_vm0, %v762_v46 }
 0x3a8   :  { %v1796_v47 = vpop.f32.mrf.mxu0  ;;  %1848 = vmatmul.mubr.msk.f32.gmra.mxu0 %vm247_vm0, %v1793_v44 }
 0x3aa   :  { %v772_v48 = vpop.f32.mrf.mxu0 }
 0x3ab   :  { %1850 = vmatprep.mubr.msk.f32.mxu0 %vm247_vm0, %v772_v48 }
 0x3ac   :  { %v1743_v49 = vpop.f32.mrf.mxu1  ;;  %v1799_v50 = vpop.f32.mrf.mxu0  ;;  %1851 = vmatmul.mubr.msk.f32.gmra.mxu0 %vm247_vm0, %v1796_v47 }
 0x3ad   :  { %1385 = vst [vmem:[#allocation9 + $0x58] sm:$0xff] %v1743_v49 }
 0x3ae   :  { %v412_v51 = vpop.f32.mrf.mxu1  ;;  %v782_v52 = vpop.f32.mrf.mxu0 }
 0x3af   :  { %1384 = vst [vmem:[#allocation9 + $0x50] sm:$0xff] %v412_v51  ;;  %1853 = vmatprep.mubr.msk.f32.mxu0 %vm247_vm0, %v782_v52 }
 0x3b0   :  { %1854 = vmatmul.mubr.msk.f32.gmra.mxu0 %vm247_vm0, %v1799_v50 }
 0x3b4   :  { %v1746_v53 = vpop.f32.mrf.mxu1  ;;  %v1802_v54 = vpop.f32.mrf.mxu0 }
 0x3b5   :  { %1387 = vst [vmem:[#allocation9 + $0x68] sm:$0xff] %v1746_v53 }
 0x3b6   :  { %v422_v55 = vpop.f32.mrf.mxu1  ;;  %v792_v56 = vpop.f32.mrf.mxu0 }
 0x3b7   :  { %1386 = vst [vmem:[#allocation9 + $0x60] sm:$0xff] %v422_v55  ;;  %1856 = vmatprep.mubr.msk.f32.mxu0 %vm247_vm0, %v792_v56 }
 0x3b8   :  { %1857 = vmatmul.mubr.msk.f32.gmra.mxu0 %vm247_vm0, %v1802_v54 }
 0x3bc   :  { %v1749_v57 = vpop.f32.mrf.mxu1  ;;  %v1805_v58 = vpop.f32.mrf.mxu0 }
 0x3bd   :  { %1389 = vst [vmem:[#allocation9 + $0x78] sm:$0xff] %v1749_v57 }
 0x3be   :  { %v432_v59 = vpop.f32.mrf.mxu1  ;;  %v802_v60 = vpop.f32.mrf.mxu0 }
 0x3bf   :  { %1388 = vst [vmem:[#allocation9 + $0x70] sm:$0xff] %v432_v59  ;;  %1859 = vmatprep.mubr.msk.f32.mxu0 %vm247_vm0, %v802_v60 }
 0x3c0   :  { %v1756_v61 = vpop.f32.mrf.mxu1  ;;  %1860 = vmatmul.mubr.msk.f32.gmra.mxu0 %vm247_vm0, %v1805_v58 }
 0x3c1   :  { %1391 = vst [vmem:[#allocation9 + $0x88] sm:$0xff] %v1756_v61 }
 0x3c2   :  { %v587_v62 = vpop.f32.mrf.mxu1 }
 0x3c3   :  { %1390 = vst [vmem:[#allocation9 + $0x80] sm:$0xff] %v587_v62 }
 0x3c4   :  { %v1759_v63 = vpop.f32.mrf.mxu1 }
 0x3c5   :  { %1393 = vst [vmem:[#allocation9 + $0x98] sm:$0xff] %v1759_v63 }
 0x3c6   :  { %v597_v0 = vpop.f32.mrf.mxu1 }
 0x3c7   :  { %1392 = vst [vmem:[#allocation9 + $0x90] sm:$0xff] %v597_v0 }
 0x3c8   :  { %v1762_v1 = vpop.f32.mrf.mxu1 }
 0x3c9   :  { %1395 = vst [vmem:[#allocation9 + $0xa8] sm:$0xff] %v1762_v1 }
 0x3ca   :  { %v607_v2 = vpop.f32.mrf.mxu1 }
 0x3cb   :  { %1394 = vst [vmem:[#allocation9 + $0xa0] sm:$0xff] %v607_v2 }
 0x3cc   :  { %v1765_v3 = vpop.f32.mrf.mxu1 }
 0x3cd   :  { %1397 = vst [vmem:[#allocation9 + $0xb8] sm:$0xff] %v1765_v3 }
 0x3ce   :  { %v617_v4 = vpop.f32.mrf.mxu1 }
 0x3cf   :  { %1396 = vst [vmem:[#allocation9 + $0xb0] sm:$0xff] %v617_v4 }
 0x3d0   :  { %v1768_v5 = vpop.f32.mrf.mxu1 }
 0x3d1   :  { %1399 = vst [vmem:[#allocation9 + $0xc8] sm:$0xff] %v1768_v5 }
 0x3d2   :  { %v627_v6 = vpop.f32.mrf.mxu1 }
 0x3d3   :  { %1398 = vst [vmem:[#allocation9 + $0xc0] sm:$0xff] %v627_v6 }
 0x3d4   :  { %v1771_v7 = vpop.f32.mrf.mxu1 }
 0x3d5   :  { %1401 = vst [vmem:[#allocation9 + $0xd8] sm:$0xff] %v1771_v7 }
 0x3d6   :  { %v637_v8 = vpop.f32.mrf.mxu1 }
 0x3d7   :  { %1400 = vst [vmem:[#allocation9 + $0xd0] sm:$0xff] %v637_v8 }
 0x3d8   :  { %v1774_v10 = vpop.f32.mrf.mxu1 }
 0x3d9   :  { %1403 = vst [vmem:[#allocation9 + $0xe8] sm:$0xff] %v1774_v10 }
 0x3da   :  { %v647_v11 = vpop.f32.mrf.mxu1 }
 0x3db   :  { %1402 = vst [vmem:[#allocation9 + $0xe0] sm:$0xff] %v647_v11 }
 0x3dc   :  { %v1777_v12 = vpop.f32.mrf.mxu1 }
 0x3dd   :  { %1405 = vst [vmem:[#allocation9 + $0xf8] sm:$0xff] %v1777_v12 }
 0x3de   :  { %v657_v13 = vpop.f32.mrf.mxu1 }
 0x3df   :  { %1404 = vst [vmem:[#allocation9 + $0xf0] sm:$0xff] %v657_v13 }
 0x3e0   :  { %v1812_v9 = vpop.f32.mrf.mxu1 }
 0x3e2   :  { %v877_v14 = vpop.f32.mrf.mxu1 }
 0x3e3   :  { %1866 = vmatprep.mubr.msk.f32.mxu1 %vm247_vm0, %v877_v14 }
 0x3e4   :  { %v1815_v15 = vpop.f32.mrf.mxu1  ;;  %1867 = vmatmul.mubr.msk.f32.vlgmr.msra.gmra.mxu1 %vm247_vm0, %v1812_v9 }
 0x3e6   :  { %v887_v16 = vpop.f32.mrf.mxu1 }
 0x3e7   :  { %1869 = vmatprep.mubr.msk.f32.mxu1 %vm247_vm0, %v887_v16 }
 0x3e8   :  { %v1818_v17 = vpop.f32.mrf.mxu1  ;;  %1870 = vmatmul.mubr.msk.f32.gmra.mxu1 %vm247_vm0, %v1815_v15 }
 0x3ea   :  { %v897_v18 = vpop.f32.mrf.mxu1 }
 0x3eb   :  { %1872 = vmatprep.mubr.msk.f32.mxu1 %vm247_vm0, %v897_v18 }
 0x3ec   :  { %v1821_v19 = vpop.f32.mrf.mxu1  ;;  %1873 = vmatmul.mubr.msk.f32.gmra.mxu1 %vm247_vm0, %v1818_v17 }
 0x3ee   :  { %v907_v20 = vpop.f32.mrf.mxu1 }
 0x3ef   :  { %1875 = vmatprep.mubr.msk.f32.mxu1 %vm247_vm0, %v907_v20 }
 0x3f0   :  { %v1824_v21 = vpop.f32.mrf.mxu1  ;;  %1876 = vmatmul.mubr.msk.f32.gmra.mxu1 %vm247_vm0, %v1821_v19 }
 0x3f2   :  { %v917_v22 = vpop.f32.mrf.mxu1 }
 0x3f3   :  { %1878 = vmatprep.mubr.msk.f32.mxu1 %vm247_vm0, %v917_v22 }
 0x3f4   :  { %v1827_v23 = vpop.f32.mrf.mxu1  ;;  %1879 = vmatmul.mubr.msk.f32.gmra.mxu1 %vm247_vm0, %v1824_v21 }
 0x3f6   :  { %v927_v24 = vpop.f32.mrf.mxu1 }
 0x3f7   :  { %1881 = vmatprep.mubr.msk.f32.mxu1 %vm247_vm0, %v927_v24 }
 0x3f8   :  { %v1830_v25 = vpop.f32.mrf.mxu1  ;;  %1882 = vmatmul.mubr.msk.f32.gmra.mxu1 %vm247_vm0, %v1827_v23 }
 0x3fa   :  { %v937_v26 = vpop.f32.mrf.mxu1 }
 0x3fb   :  { %1884 = vmatprep.mubr.msk.f32.mxu1 %vm247_vm0, %v937_v26 }
 0x3fc   :  { %v1833_v27 = vpop.f32.mrf.mxu1  ;;  %1885 = vmatmul.mubr.msk.f32.gmra.mxu1 %vm247_vm0, %v1830_v25 }
 0x3fe   :  { %v947_v28 = vpop.f32.mrf.mxu1 }
 0x3ff   :  { %1887 = vmatprep.mubr.msk.f32.mxu1 %vm247_vm0, %v947_v28 }
 0x400   :  { %1888 = vmatmul.mubr.msk.f32.gmra.mxu1 %vm247_vm0, %v1833_v27 }
 0x401   :  { %1990 = shalt.err (!%p1987_p5)
}
 0x402   :  { %1433 = dma.vmem_to_hbm [thread:$0]  %s1428_s13, 4096, %s2276_s5, [#allocation10], %s2049_s26, %s2049_s26, %s2050_s27  }
 0x403   :  { %s2053_s17 = smov [#allocation11]  }
 0x404   :  { %s1439_s18 = sshll.u32 %s2053_s17, 4  ;;  %s1440_s18 = int_to_ptr.vmem [resolvable:$true] %s1439_s18 }
 0x405   :  { %s1999_s19 = scalar_lea.vmem %s1440_s18, 512  ;;  %p2004_p7 = scmp.lt.s32.totalorder %s1440_s18, %s1440_s18 }
 0x406   :  { %p2000_p6 = scmp.ne.s32.totalorder %s1440_s18, %s1999_s19  ;;  %p2005_p8 = scmp.lt.s32.totalorder %s1999_s19, %s1999_s19 }
 0x408   :  { %p2006_p9 = por %p2005_p8, %p2004_p7 }
 0x40a   :  { %p2007_p10 = pnand %p2006_p9, %p2000_p6 }
 0x40c   :  { %2010 = shalt.err (!%p2007_p10)
}
 0x40d   :  { %1445 = dma.vmem_to_hbm [thread:$0]  %s1440_s18, 512, %s2277_s6, [#allocation10], %s2049_s26, %s2049_s26, %s2050_s27  }
 0x40e   :  { %s2054_s5 = smov [#allocation8]  }
 0x40f   :  { %s1415_s6 = sshll.u32 %s2054_s5, 4  ;;  %s1416_s6 = int_to_ptr.vmem [resolvable:$true] %s1415_s6 }
 0x410   :  { %s2019_s22 = scalar_lea.vmem %s1416_s6, 4096  ;;  %p2024_p12 = scmp.lt.s32.totalorder %s1416_s6, %s1416_s6 }
 0x411   :  { %p2020_p11 = scmp.ne.s32.totalorder %s1416_s6, %s2019_s22  ;;  %p2025_p13 = scmp.lt.s32.totalorder %s2019_s22, %s2019_s22 }
 0x413   :  { %p2026_p0 = por %p2025_p13, %p2024_p12 }
 0x415   :  { %p2027_p1 = pnand %p2026_p0, %p2020_p11 }
 0x45c   :  { %v1840_v29 = vpop.f32.mrf.mxu0 }
 0x45d   :  { %1343 = vst [vmem:[#allocation8 + $0x8] sm:$0xff] %v1840_v29 }
 0x45e   :  { %v1070_v30 = vpop.f32.mrf.mxu0 }
 0x45f   :  { %1342 = vst [vmem:[#allocation8] sm:$0xff] %v1070_v30 }
 0x460   :  { %v1843_v31 = vpop.f32.mrf.mxu0 }
 0x461   :  { %1345 = vst [vmem:[#allocation8 + $0x18] sm:$0xff] %v1843_v31 }
 0x462   :  { %v1080_v32 = vpop.f32.mrf.mxu0 }
 0x463   :  { %1344 = vst [vmem:[#allocation8 + $0x10] sm:$0xff] %v1080_v32 }
 0x464   :  { %v1846_v33 = vpop.f32.mrf.mxu0 }
 0x465   :  { %1347 = vst [vmem:[#allocation8 + $0x28] sm:$0xff] %v1846_v33 }
 0x466   :  { %v1090_v34 = vpop.f32.mrf.mxu0 }
 0x467   :  { %1346 = vst [vmem:[#allocation8 + $0x20] sm:$0xff] %v1090_v34 }
 0x468   :  { %v1849_v35 = vpop.f32.mrf.mxu0 }
 0x469   :  { %1349 = vst [vmem:[#allocation8 + $0x38] sm:$0xff] %v1849_v35 }
 0x46a   :  { %v1100_v36 = vpop.f32.mrf.mxu0 }
 0x46b   :  { %1348 = vst [vmem:[#allocation8 + $0x30] sm:$0xff] %v1100_v36 }
 0x46c   :  { %v1852_v37 = vpop.f32.mrf.mxu0 }
 0x46d   :  { %1351 = vst [vmem:[#allocation8 + $0x48] sm:$0xff] %v1852_v37 }
 0x46e   :  { %v1110_v38 = vpop.f32.mrf.mxu0 }
 0x46f   :  { %1350 = vst [vmem:[#allocation8 + $0x40] sm:$0xff] %v1110_v38 }
 0x470   :  { %v1855_v39 = vpop.f32.mrf.mxu0 }
 0x471   :  { %1353 = vst [vmem:[#allocation8 + $0x58] sm:$0xff] %v1855_v39 }
 0x472   :  { %v1120_v40 = vpop.f32.mrf.mxu0 }
 0x473   :  { %1352 = vst [vmem:[#allocation8 + $0x50] sm:$0xff] %v1120_v40 }
 0x478   :  { %v1858_v41 = vpop.f32.mrf.mxu0 }
 0x479   :  { %1355 = vst [vmem:[#allocation8 + $0x68] sm:$0xff] %v1858_v41 }
 0x47a   :  { %v1130_v42 = vpop.f32.mrf.mxu0 }
 0x47b   :  { %1354 = vst [vmem:[#allocation8 + $0x60] sm:$0xff] %v1130_v42 }
 0x480   :  { %v1861_v43 = vpop.f32.mrf.mxu0 }
 0x481   :  { %1357 = vst [vmem:[#allocation8 + $0x78] sm:$0xff] %v1861_v43 }
 0x482   :  { %v1140_v44 = vpop.f32.mrf.mxu0 }
 0x483   :  { %1356 = vst [vmem:[#allocation8 + $0x70] sm:$0xff] %v1140_v44 }
 0x4a4   :  { %v1868_v45 = vpop.f32.mrf.mxu1 }
 0x4a5   :  { %1359 = vst [vmem:[#allocation8 + $0x88] sm:$0xff] %v1868_v45 }
 0x4a6   :  { %v1263_v46 = vpop.f32.mrf.mxu1 }
 0x4a7   :  { %1358 = vst [vmem:[#allocation8 + $0x80] sm:$0xff] %v1263_v46 }
 0x4a8   :  { %v1871_v47 = vpop.f32.mrf.mxu1 }
 0x4a9   :  { %1361 = vst [vmem:[#allocation8 + $0x98] sm:$0xff] %v1871_v47 }
 0x4aa   :  { %v1273_v48 = vpop.f32.mrf.mxu1 }
 0x4ab   :  { %1360 = vst [vmem:[#allocation8 + $0x90] sm:$0xff] %v1273_v48 }
 0x4ac   :  { %v1874_v49 = vpop.f32.mrf.mxu1 }
 0x4ad   :  { %1363 = vst [vmem:[#allocation8 + $0xa8] sm:$0xff] %v1874_v49 }
 0x4ae   :  { %v1283_v50 = vpop.f32.mrf.mxu1 }
 0x4af   :  { %1362 = vst [vmem:[#allocation8 + $0xa0] sm:$0xff] %v1283_v50 }
 0x4b0   :  { %v1877_v51 = vpop.f32.mrf.mxu1 }
 0x4b1   :  { %1365 = vst [vmem:[#allocation8 + $0xb8] sm:$0xff] %v1877_v51 }
 0x4b2   :  { %v1293_v52 = vpop.f32.mrf.mxu1 }
 0x4b3   :  { %1364 = vst [vmem:[#allocation8 + $0xb0] sm:$0xff] %v1293_v52 }
 0x4b4   :  { %v1880_v53 = vpop.f32.mrf.mxu1 }
 0x4b5   :  { %1367 = vst [vmem:[#allocation8 + $0xc8] sm:$0xff] %v1880_v53 }
 0x4b6   :  { %v1303_v54 = vpop.f32.mrf.mxu1 }
 0x4b7   :  { %1366 = vst [vmem:[#allocation8 + $0xc0] sm:$0xff] %v1303_v54 }
 0x4b8   :  { %v1883_v55 = vpop.f32.mrf.mxu1 }
 0x4b9   :  { %1369 = vst [vmem:[#allocation8 + $0xd8] sm:$0xff] %v1883_v55 }
 0x4ba   :  { %v1313_v56 = vpop.f32.mrf.mxu1 }
 0x4bb   :  { %1368 = vst [vmem:[#allocation8 + $0xd0] sm:$0xff] %v1313_v56 }
 0x4bc   :  { %v1886_v57 = vpop.f32.mrf.mxu1 }
 0x4bd   :  { %1371 = vst [vmem:[#allocation8 + $0xe8] sm:$0xff] %v1886_v57 }
 0x4be   :  { %v1323_v58 = vpop.f32.mrf.mxu1 }
 0x4bf   :  { %1370 = vst [vmem:[#allocation8 + $0xe0] sm:$0xff] %v1323_v58 }
 0x4c0   :  { %v1889_v59 = vpop.f32.mrf.mxu1 }
 0x4c1   :  { %1373 = vst [vmem:[#allocation8 + $0xf8] sm:$0xff] %v1889_v59 }
 0x4c2   :  { %v1333_v60 = vpop.f32.mrf.mxu1 }
 0x4c3   :  { %1372 = vst [vmem:[#allocation8 + $0xf0] sm:$0xff] %v1333_v60 }
 0x4c4   :  { %2030 = shalt.err (!%p2027_p1)
}
 0x4c5   :  { %1421 = dma.vmem_to_hbm [thread:$0]  %s1416_s6, 4096, %s2275_s4, [#allocation4], %s2049_s26, %s2049_s26, %s2050_s27  }
 0x4c6   :  { %2043 = dma.done.wait [#allocation4], 4096  }
 0x4c7   :  { %2044 = vsyncadd [#allocation4], 4294963200 }
 0x4c8   :  { %2045 = dma.done.wait [#allocation10], 4608  }
 0x4c9   :  { %2046 = vsyncadd [#allocation10], 4294962688 }
 0x4ca   :  { %1455 = vsyncpa [#allocation3], 1 }
 0x4cb   :  { %1456 = vsyncpa [#allocation6], 1 }
 0x4cc   :  { %1457 = vsyncpa [#allocation4], 1 }
 0x4cd   :  { %1458 = vsyncpa [#allocation10], 1 }

</bundles_post_ra>
